<compile_context>
chip_gen: v5e
topology: v5e:2x2
jax: 0.10.0
libtpu: 0.0.40
codegen_flags: <defaults>
</compile_context>

<pallas_src>
import functools

import numpy as np
import jax
import jax.numpy as jnp
from jax.experimental import pallas as pl
from jax.experimental.pallas import tpu as pltpu

BN_EPS = 1e-5
LANE = 128       # pad every feature / class dim to the 128-lane boundary
NODE_TILE = 16   # per-graph node padding (bf16 sublane tile)


def _round_up(x, m):
    return (x + m - 1) // m * m


def _gcn_layer(h_in, a_bf16, mask, inv_n, g, npad, w, b_node, gamma, beta,
               *, residual):
    """One GCNLayer: GraphConv -> (snorm pre-folded) -> BatchNorm -> ReLU -> (+res).

    a_bf16   : [G, npad, npad] bf16, rows already scaled by snorm (graph_norm)
    b_node   : [G*npad, F]     per-node bias, already scaled by snorm
    mask     : [G*npad, 1]     1.0 for real nodes, 0.0 for padded rows
    inv_n    : static float    1 / (total number of real nodes)
    """
    feat = h_in.shape[-1]

    # --- aggregation over block-diagonal adjacency, per graph, bf16 on MXU ---
    h3 = h_in.astype(jnp.bfloat16).reshape(g, npad, feat)
    agg = jnp.einsum('gij,gjf->gif', a_bf16, h3,
                     preferred_element_type=jnp.float32)
    agg = agg.reshape(g * npad, feat)

    # --- dense weight + per-node (snorm-scaled) bias ---
    h = jnp.dot(agg, w, preferred_element_type=jnp.float32) + b_node

    # --- BatchNorm1d, training-mode stats over all valid nodes, single pass ---
    hm = h * mask
    s1 = jnp.sum(hm, axis=0, keepdims=True)
    s2 = jnp.sum(hm * hm, axis=0, keepdims=True)
    mu = s1 * inv_n
    var = jnp.maximum(s2 * inv_n - mu * mu, 0.0)
    h = (h - mu) * jax.lax.rsqrt(var + BN_EPS) * gamma + beta

    # --- ReLU, re-zero padded node rows, residual (static per-layer choice) ---
    h = jnp.maximum(h, 0.0) * mask
    if residual:
        h = h_in + h
    # dropout(p=0.0) is a no-op
    return h


def gcnnet2_kernel(a_ref, x_ref, mask_ref, pool_ref,
                   emb_w_ref, emb_b_ref,
                   w1_ref, b1_ref, g1_ref, be1_ref,
                   w2_ref, b2_ref, g2_ref, be2_ref,
                   ro_w_ref, out_ref, *, inv_n):
    g, npad, _ = a_ref.shape
    a = a_ref[...]
    mask = mask_ref[...]

    # embedding_h: Linear(in_dim, in_dim) (padded to 128 lanes)
    h = jnp.dot(x_ref[...], emb_w_ref[...],
                preferred_element_type=jnp.float32) + emb_b_ref[...]
    h = h * mask  # keep padded node rows at zero

    # GCN layer 1: in_dim -> hidden (residual statically off: dims differ)
    h = _gcn_layer(h, a, mask, inv_n, g, npad, w1_ref[...], b1_ref[...],
                   g1_ref[...], be1_ref[...], residual=False)
    # GCN layer 2: hidden -> hidden (residual on)
    h = _gcn_layer(h, a, mask, inv_n, g, npad, w2_ref[...], b2_ref[...],
                   g2_ref[...], be2_ref[...], residual=True)

    # readout: mean over nodes of each graph (pool rows hold 1/n_g at real nodes)
    hg = jnp.dot(pool_ref[...], h, preferred_element_type=jnp.float32)
    # readout_mlp: Linear(hidden, n_classes, bias=False); classes padded to 128
    out_ref[...] = jnp.dot(hg, ro_w_ref[...], preferred_element_type=jnp.float32)


def prepare_inputs(adjs, x_nodes, params_raw, n_classes):
    """Host-side packing: block-diagonal bf16 adjacency (snorm folded in),
    lane-padded features / weights, per-node snorm-scaled biases, node mask,
    and per-graph mean-pooling matrix."""
    G = len(adjs)
    in_dim = x_nodes.shape[1]
    hidden = np.asarray(params_raw['w1']).shape[1]
    npad = _round_up(max(a.shape[0] for a in adjs), NODE_TILE)
    fpad = _round_up(max(in_dim, hidden), LANE)
    cpad = _round_up(n_classes, LANE)
    ntot = G * npad

    a_blk = np.zeros((G, npad, npad), np.float32)
    mask = np.zeros((ntot, 1), np.float32)
    snorm = np.zeros((ntot, 1), np.float32)
    pool = np.zeros((G, ntot), np.float32)
    x_pad = np.zeros((ntot, fpad), np.float32)

    off = 0
    n_valid = 0
    for gi, adj in enumerate(adjs):
        n = adj.shape[0]
        deg = np.clip(adj.sum(axis=1), 1.0, None)
        dis = 1.0 / np.sqrt(deg)
        a_norm = dis[:, None] * adj * dis[None, :]
        sn = 1.0 / np.sqrt(n)
        # fold graph_norm (snorm) into the adjacency rows (free, host-side)
        a_blk[gi, :n, :n] = sn * a_norm
        r0 = gi * npad
        mask[r0:r0 + n, 0] = 1.0
        snorm[r0:r0 + n, 0] = sn
        pool[gi, r0:r0 + n] = 1.0 / n
        x_pad[r0:r0 + n, :in_dim] = np.asarray(x_nodes[off:off + n])
        off += n
        n_valid += n

    def pad2(w, r, c):
        w = np.asarray(w, np.float32)
        out = np.zeros((r, c), np.float32)
        out[:w.shape[0], :w.shape[1]] = w
        return out

    p = params_raw
    inp = {
        'a': jnp.asarray(a_blk, jnp.bfloat16),      # bf16 adjacency blocks
        'x': jnp.asarray(x_pad),
        'mask': jnp.asarray(mask),
        'pool': jnp.asarray(pool),
        'emb_w': jnp.asarray(pad2(p['emb_w'], fpad, fpad)),
        'emb_b': jnp.asarray(pad2(np.asarray(p['emb_b'])[None, :], 1, fpad)),
        'w1': jnp.asarray(pad2(p['w1'], fpad, fpad)),
        'b1': jnp.asarray(snorm * pad2(np.asarray(p['b1'])[None, :], 1, fpad)),
        'g1': jnp.asarray(pad2(np.asarray(p['g1'])[None, :], 1, fpad)),
        'be1': jnp.asarray(pad2(np.asarray(p['be1'])[None, :], 1, fpad)),
        'w2': jnp.asarray(pad2(p['w2'], fpad, fpad)),
        'b2': jnp.asarray(snorm * pad2(np.asarray(p['b2'])[None, :], 1, fpad)),
        'g2': jnp.asarray(pad2(np.asarray(p['g2'])[None, :], 1, fpad)),
        'be2': jnp.asarray(pad2(np.asarray(p['be2'])[None, :], 1, fpad)),
        'ro_w': jnp.asarray(pad2(p['ro_w'], fpad, cpad)),
        'inv_n': 1.0 / float(n_valid),
    }
    return inp


def gcnnet2_forward(inp, n_classes):
    order = ('a', 'x', 'mask', 'pool', 'emb_w', 'emb_b',
             'w1', 'b1', 'g1', 'be1', 'w2', 'b2', 'g2', 'be2', 'ro_w')
    args = [inp[k] for k in order]

    G, npad, _ = inp['a'].shape
    ntot, fpad = inp['x'].shape
    cpad = inp['ro_w'].shape[1]

    flops = int(2 * ntot * fpad * fpad                       # embedding
                + 2 * (2 * G * npad * npad * fpad            # 2x aggregation
                       + 2 * ntot * fpad * fpad)             # 2x weight matmul
                + 2 * G * ntot * fpad                        # pooling
                + 2 * G * fpad * cpad)                       # classifier
    bytes_accessed = int(sum(int(np.prod(a.shape)) * a.dtype.itemsize
                             for a in args) + G * cpad * 4)

    kern = functools.partial(gcnnet2_kernel, inv_n=inp['inv_n'])
    out = pl.pallas_call(
        kern,
        out_shape=jax.ShapeDtypeStruct((G, cpad), jnp.float32),
        in_specs=[pl.BlockSpec(memory_space=pltpu.MemorySpace.VMEM)] * len(args),
        out_specs=pl.BlockSpec(memory_space=pltpu.MemorySpace.VMEM),
        compiler_params=pltpu.CompilerParams(
            vmem_limit_bytes=32 * 1024 * 1024),
        cost_estimate=pl.CostEstimate(flops=flops,
                                      transcendentals=int(2 * fpad),
                                      bytes_accessed=bytes_accessed),
    )(*args)
    return out[:, :n_classes]


def _reference(a_norm, snorm, pool, x, p):
    """Plain-JAX f32 reference of GCNNet2.forward (training-mode BatchNorm)."""
    h = x @ p['emb_w'] + p['emb_b'][None, :]

    def layer(h_in, w, b, g, be, residual):
        hh = (a_norm @ h_in) @ w + b[None, :]
        hh = hh * snorm
        mu = hh.mean(axis=0, keepdims=True)
        var = ((hh - mu) ** 2).mean(axis=0, keepdims=True)
        hh = (hh - mu) / jnp.sqrt(var + BN_EPS) * g[None, :] + be[None, :]
        hh = jnp.maximum(hh, 0.0)
        return h_in + hh if residual else hh

    h = layer(h, p['w1'], p['b1'], p['g1'], p['be1'], False)
    h = layer(h, p['w2'], p['b2'], p['g2'], p['be2'], True)
    return (pool @ h) @ p['ro_w']


if __name__ == "__main__":
    # ---- problem sizes (small, consistent with the module) ----
    in_dim, hidden, n_classes = 32, 64, 10
    n_graphs, nodes_per_graph = 2, 16
    N = n_graphs * nodes_per_graph

    key = jax.random.PRNGKey(0)
    keys = jax.random.split(key, 16)
    s = 0.1
    params_raw = {
        'emb_w': jax.random.normal(keys[0], (in_dim, in_dim), jnp.float32) * s,
        'emb_b': jax.random.normal(keys[1], (in_dim,), jnp.float32) * s,
        'w1': jax.random.normal(keys[2], (in_dim, hidden), jnp.float32) * s,
        'b1': jax.random.normal(keys[3], (hidden,), jnp.float32) * s,
        'g1': 1.0 + 0.1 * jax.random.normal(keys[4], (hidden,), jnp.float32),
        'be1': 0.1 * jax.random.normal(keys[5], (hidden,), jnp.float32),
        'w2': jax.random.normal(keys[6], (hidden, hidden), jnp.float32) * s,
        'b2': jax.random.normal(keys[7], (hidden,), jnp.float32) * s,
        'g2': 1.0 + 0.1 * jax.random.normal(keys[8], (hidden,), jnp.float32),
        'be2': 0.1 * jax.random.normal(keys[9], (hidden,), jnp.float32),
        'ro_w': jax.random.normal(keys[10], (hidden, n_classes), jnp.float32) * s,
    }
    nodes_feat = jax.random.normal(keys[11], (N, in_dim), jnp.float32)

    # ---- deterministic batched graph: one ring graph per sample ----
    adjs = []
    for _ in range(n_graphs):
        adj = np.zeros((nodes_per_graph, nodes_per_graph), np.float32)
        for i in range(nodes_per_graph):
            j = (i + 1) % nodes_per_graph
            adj[i, j] = 1.0
            adj[j, i] = 1.0
        adjs.append(adj)

    # ---- run the Pallas kernel ----
    inp = prepare_inputs(adjs, np.asarray(nodes_feat), params_raw, n_classes)
    logits = gcnnet2_forward(inp, n_classes)
    logits = jax.block_until_ready(logits)
    assert logits.shape == (n_graphs, n_classes)

    # ---- f32 reference on the unpadded dense block-diagonal problem ----
    a_dense = np.zeros((N, N), np.float32)
    snorm = np.zeros((N, 1), np.float32)
    pool = np.zeros((n_graphs, N), np.float32)
    off = 0
    for g, adj in enumerate(adjs):
        n = adj.shape[0]
        deg = np.clip(adj.sum(axis=1), 1.0, None)
        dis = 1.0 / np.sqrt(deg)
        a_dense[off:off + n, off:off + n] = dis[:, None] * adj * dis[None, :]
        snorm[off:off + n, 0] = 1.0 / np.sqrt(n)
        pool[g, off:off + n] = 1.0 / n
        off += n

    with jax.default_matmul_precision('highest'):
        ref = _reference(jnp.asarray(a_dense), jnp.asarray(snorm),
                         jnp.asarray(pool), nodes_feat, params_raw)
        ref = jax.block_until_ready(ref)

    # bf16 aggregation path in the kernel -> loosened tolerance vs f32 reference
    np.testing.assert_allclose(np.asarray(logits), np.asarray(ref),
                               rtol=5e-2, atol=5e-2)

    print("KERNEL_OK")
</pallas_src>

<mosaic_0001>
module attributes {stable_mosaic.version = 11 : i64} {
  func.func @gcnnet2_kernel(%arg0: memref<2x16x16xbf16, #tpu.memory_space<vmem>>, %arg1: memref<32x128xf32, #tpu.memory_space<vmem>>, %arg2: memref<32x1xf32, #tpu.memory_space<vmem>>, %arg3: memref<2x32xf32, #tpu.memory_space<vmem>>, %arg4: memref<128x128xf32, #tpu.memory_space<vmem>>, %arg5: memref<1x128xf32, #tpu.memory_space<vmem>>, %arg6: memref<128x128xf32, #tpu.memory_space<vmem>>, %arg7: memref<32x128xf32, #tpu.memory_space<vmem>>, %arg8: memref<1x128xf32, #tpu.memory_space<vmem>>, %arg9: memref<1x128xf32, #tpu.memory_space<vmem>>, %arg10: memref<128x128xf32, #tpu.memory_space<vmem>>, %arg11: memref<32x128xf32, #tpu.memory_space<vmem>>, %arg12: memref<1x128xf32, #tpu.memory_space<vmem>>, %arg13: memref<1x128xf32, #tpu.memory_space<vmem>>, %arg14: memref<128x128xf32, #tpu.memory_space<vmem>>, %arg15: memref<2x128xf32, #tpu.memory_space<vmem>>) attributes {dimension_semantics = [], scalar_prefetch = 0 : i64, scratch_operands = 0 : i64, tpu.core_type = #tpu.core_type<tc>} {
    %c0 = arith.constant 0 : index
    %c0_0 = arith.constant 0 : index
    %c0_1 = arith.constant 0 : index
    %0 = vector.load %arg0[%c0, %c0_0, %c0_1] : memref<2x16x16xbf16, #tpu.memory_space<vmem>>, vector<2x16x16xbf16>
    %c0_2 = arith.constant 0 : index
    %c0_3 = arith.constant 0 : index
    %1 = vector.load %arg2[%c0_2, %c0_3] : memref<32x1xf32, #tpu.memory_space<vmem>>, vector<32x1xf32>
    %c0_4 = arith.constant 0 : index
    %c0_5 = arith.constant 0 : index
    %2 = vector.load %arg1[%c0_4, %c0_5] : memref<32x128xf32, #tpu.memory_space<vmem>>, vector<32x128xf32>
    %c0_6 = arith.constant 0 : index
    %c0_7 = arith.constant 0 : index
    %3 = vector.load %arg4[%c0_6, %c0_7] : memref<128x128xf32, #tpu.memory_space<vmem>>, vector<128x128xf32>
    %cst = arith.constant dense<0.000000e+00> : vector<32x128xf32>
    %4 = tpu.matmul %2, %3, %cst {dimension_numbers = #tpu.dot_dimension_numbers<[1], [0], [0], [1], [0, 0, 1, 1], [], []>} : vector<32x128xf32>, vector<128x128xf32>, vector<32x128xf32> -> vector<32x128xf32>
    %c0_8 = arith.constant 0 : index
    %c0_9 = arith.constant 0 : index
    %5 = vector.load %arg5[%c0_8, %c0_9] : memref<1x128xf32, #tpu.memory_space<vmem>>, vector<1x128xf32>
    %6 = vector.broadcast %5 : vector<1x128xf32> to vector<32x128xf32>
    %7 = arith.addf %4, %6 : vector<32x128xf32>
    %8 = vector.broadcast %1 : vector<32x1xf32> to vector<32x128xf32>
    %9 = arith.mulf %7, %8 : vector<32x128xf32>
    %c0_10 = arith.constant 0 : index
    %c0_11 = arith.constant 0 : index
    %10 = vector.load %arg6[%c0_10, %c0_11] : memref<128x128xf32, #tpu.memory_space<vmem>>, vector<128x128xf32>
    %c0_12 = arith.constant 0 : index
    %c0_13 = arith.constant 0 : index
    %11 = vector.load %arg7[%c0_12, %c0_13] : memref<32x128xf32, #tpu.memory_space<vmem>>, vector<32x128xf32>
    %c0_14 = arith.constant 0 : index
    %c0_15 = arith.constant 0 : index
    %12 = vector.load %arg8[%c0_14, %c0_15] : memref<1x128xf32, #tpu.memory_space<vmem>>, vector<1x128xf32>
    %c0_16 = arith.constant 0 : index
    %c0_17 = arith.constant 0 : index
    %13 = vector.load %arg9[%c0_16, %c0_17] : memref<1x128xf32, #tpu.memory_space<vmem>>, vector<1x128xf32>
    %14 = arith.truncf %9 : vector<32x128xf32> to vector<32x128xbf16>
    %15 = vector.shape_cast %14 : vector<32x128xbf16> to vector<2x16x128xbf16>
    "tpu.trace_start"() <{level = 10 : i32, message = "gij,gjf->gif"}> : () -> ()
    %cst_18 = arith.constant dense<0.000000e+00> : vector<2x16x128xf32>
    %16 = tpu.matmul %0, %15, %cst_18 {dimension_numbers = #tpu.dot_dimension_numbers<[2], [1], [1], [2], [0, 0, 0, 1, 1, 2], [0], [0]>} : vector<2x16x16xbf16>, vector<2x16x128xbf16>, vector<2x16x128xf32> -> vector<2x16x128xf32>
    "tpu.trace_stop"() : () -> ()
    %17 = vector.shape_cast %16 : vector<2x16x128xf32> to vector<32x128xf32>
    %cst_19 = arith.constant dense<0.000000e+00> : vector<32x128xf32>
    %18 = tpu.matmul %17, %10, %cst_19 {dimension_numbers = #tpu.dot_dimension_numbers<[1], [0], [0], [1], [0, 0, 1, 1], [], []>} : vector<32x128xf32>, vector<128x128xf32>, vector<32x128xf32> -> vector<32x128xf32>
    %19 = arith.addf %18, %11 : vector<32x128xf32>
    %20 = vector.broadcast %1 : vector<32x1xf32> to vector<32x128xf32>
    %21 = arith.mulf %19, %20 : vector<32x128xf32>
    %cst_20 = arith.constant dense<0.000000e+00> : vector<128xf32>
    %22 = vector.multi_reduction <add>, %21, %cst_20 [0] : vector<32x128xf32> to vector<128xf32>
    %23 = vector.shape_cast %22 : vector<128xf32> to vector<1x128xf32>
    %24 = arith.mulf %21, %21 : vector<32x128xf32>
    %cst_21 = arith.constant dense<0.000000e+00> : vector<128xf32>
    %25 = vector.multi_reduction <add>, %24, %cst_21 [0] : vector<32x128xf32> to vector<128xf32>
    %26 = vector.shape_cast %25 : vector<128xf32> to vector<1x128xf32>
    %cst_22 = arith.constant 3.125000e-02 : f32
    %27 = vector.broadcast %cst_22 : f32 to vector<1x128xf32>
    %28 = arith.mulf %23, %27 : vector<1x128xf32>
    %cst_23 = arith.constant 3.125000e-02 : f32
    %29 = vector.broadcast %cst_23 : f32 to vector<1x128xf32>
    %30 = arith.mulf %26, %29 : vector<1x128xf32>
    %31 = arith.mulf %28, %28 : vector<1x128xf32>
    %32 = arith.subf %30, %31 : vector<1x128xf32>
    %cst_24 = arith.constant 0.000000e+00 : f32
    %33 = vector.broadcast %cst_24 : f32 to vector<1x128xf32>
    %34 = arith.maximumf %32, %33 : vector<1x128xf32>
    %35 = vector.broadcast %28 : vector<1x128xf32> to vector<32x128xf32>
    %36 = arith.subf %19, %35 : vector<32x128xf32>
    %cst_25 = arith.constant 9.99999974E-6 : f32
    %37 = vector.broadcast %cst_25 : f32 to vector<1x128xf32>
    %38 = arith.addf %34, %37 : vector<1x128xf32>
    %39 = math.rsqrt %38 : vector<1x128xf32>
    %40 = vector.broadcast %39 : vector<1x128xf32> to vector<32x128xf32>
    %41 = arith.mulf %36, %40 : vector<32x128xf32>
    %42 = vector.broadcast %12 : vector<1x128xf32> to vector<32x128xf32>
    %43 = arith.mulf %41, %42 : vector<32x128xf32>
    %44 = vector.broadcast %13 : vector<1x128xf32> to vector<32x128xf32>
    %45 = arith.addf %43, %44 : vector<32x128xf32>
    %cst_26 = arith.constant 0.000000e+00 : f32
    %46 = vector.broadcast %cst_26 : f32 to vector<32x128xf32>
    %47 = arith.maximumf %45, %46 : vector<32x128xf32>
    %48 = vector.broadcast %1 : vector<32x1xf32> to vector<32x128xf32>
    %49 = arith.mulf %47, %48 : vector<32x128xf32>
    %c0_27 = arith.constant 0 : index
    %c0_28 = arith.constant 0 : index
    %50 = vector.load %arg10[%c0_27, %c0_28] : memref<128x128xf32, #tpu.memory_space<vmem>>, vector<128x128xf32>
    %c0_29 = arith.constant 0 : index
    %c0_30 = arith.constant 0 : index
    %51 = vector.load %arg11[%c0_29, %c0_30] : memref<32x128xf32, #tpu.memory_space<vmem>>, vector<32x128xf32>
    %c0_31 = arith.constant 0 : index
    %c0_32 = arith.constant 0 : index
    %52 = vector.load %arg12[%c0_31, %c0_32] : memref<1x128xf32, #tpu.memory_space<vmem>>, vector<1x128xf32>
    %c0_33 = arith.constant 0 : index
    %c0_34 = arith.constant 0 : index
    %53 = vector.load %arg13[%c0_33, %c0_34] : memref<1x128xf32, #tpu.memory_space<vmem>>, vector<1x128xf32>
    %54 = arith.truncf %49 : vector<32x128xf32> to vector<32x128xbf16>
    %55 = vector.shape_cast %54 : vector<32x128xbf16> to vector<2x16x128xbf16>
    "tpu.trace_start"() <{level = 10 : i32, message = "gij,gjf->gif"}> : () -> ()
    %cst_35 = arith.constant dense<0.000000e+00> : vector<2x16x128xf32>
    %56 = tpu.matmul %0, %55, %cst_35 {dimension_numbers = #tpu.dot_dimension_numbers<[2], [1], [1], [2], [0, 0, 0, 1, 1, 2], [0], [0]>} : vector<2x16x16xbf16>, vector<2x16x128xbf16>, vector<2x16x128xf32> -> vector<2x16x128xf32>
    "tpu.trace_stop"() : () -> ()
    %57 = vector.shape_cast %56 : vector<2x16x128xf32> to vector<32x128xf32>
    %cst_36 = arith.constant dense<0.000000e+00> : vector<32x128xf32>
    %58 = tpu.matmul %57, %50, %cst_36 {dimension_numbers = #tpu.dot_dimension_numbers<[1], [0], [0], [1], [0, 0, 1, 1], [], []>} : vector<32x128xf32>, vector<128x128xf32>, vector<32x128xf32> -> vector<32x128xf32>
    %59 = arith.addf %58, %51 : vector<32x128xf32>
    %60 = vector.broadcast %1 : vector<32x1xf32> to vector<32x128xf32>
    %61 = arith.mulf %59, %60 : vector<32x128xf32>
    %cst_37 = arith.constant dense<0.000000e+00> : vector<128xf32>
    %62 = vector.multi_reduction <add>, %61, %cst_37 [0] : vector<32x128xf32> to vector<128xf32>
    %63 = vector.shape_cast %62 : vector<128xf32> to vector<1x128xf32>
    %64 = arith.mulf %61, %61 : vector<32x128xf32>
    %cst_38 = arith.constant dense<0.000000e+00> : vector<128xf32>
    %65 = vector.multi_reduction <add>, %64, %cst_38 [0] : vector<32x128xf32> to vector<128xf32>
    %66 = vector.shape_cast %65 : vector<128xf32> to vector<1x128xf32>
    %cst_39 = arith.constant 3.125000e-02 : f32
    %67 = vector.broadcast %cst_39 : f32 to vector<1x128xf32>
    %68 = arith.mulf %63, %67 : vector<1x128xf32>
    %cst_40 = arith.constant 3.125000e-02 : f32
    %69 = vector.broadcast %cst_40 : f32 to vector<1x128xf32>
    %70 = arith.mulf %66, %69 : vector<1x128xf32>
    %71 = arith.mulf %68, %68 : vector<1x128xf32>
    %72 = arith.subf %70, %71 : vector<1x128xf32>
    %cst_41 = arith.constant 0.000000e+00 : f32
    %73 = vector.broadcast %cst_41 : f32 to vector<1x128xf32>
    %74 = arith.maximumf %72, %73 : vector<1x128xf32>
    %75 = vector.broadcast %68 : vector<1x128xf32> to vector<32x128xf32>
    %76 = arith.subf %59, %75 : vector<32x128xf32>
    %cst_42 = arith.constant 9.99999974E-6 : f32
    %77 = vector.broadcast %cst_42 : f32 to vector<1x128xf32>
    %78 = arith.addf %74, %77 : vector<1x128xf32>
    %79 = math.rsqrt %78 : vector<1x128xf32>
    %80 = vector.broadcast %79 : vector<1x128xf32> to vector<32x128xf32>
    %81 = arith.mulf %76, %80 : vector<32x128xf32>
    %82 = vector.broadcast %52 : vector<1x128xf32> to vector<32x128xf32>
    %83 = arith.mulf %81, %82 : vector<32x128xf32>
    %84 = vector.broadcast %53 : vector<1x128xf32> to vector<32x128xf32>
    %85 = arith.addf %83, %84 : vector<32x128xf32>
    %cst_43 = arith.constant 0.000000e+00 : f32
    %86 = vector.broadcast %cst_43 : f32 to vector<32x128xf32>
    %87 = arith.maximumf %85, %86 : vector<32x128xf32>
    %88 = vector.broadcast %1 : vector<32x1xf32> to vector<32x128xf32>
    %89 = arith.mulf %87, %88 : vector<32x128xf32>
    %90 = arith.addf %49, %89 : vector<32x128xf32>
    %c0_44 = arith.constant 0 : index
    %c0_45 = arith.constant 0 : index
    %91 = vector.load %arg3[%c0_44, %c0_45] : memref<2x32xf32, #tpu.memory_space<vmem>>, vector<2x32xf32>
    %cst_46 = arith.constant dense<0.000000e+00> : vector<2x128xf32>
    %92 = tpu.matmul %91, %90, %cst_46 {dimension_numbers = #tpu.dot_dimension_numbers<[1], [0], [0], [1], [0, 0, 1, 1], [], []>} : vector<2x32xf32>, vector<32x128xf32>, vector<2x128xf32> -> vector<2x128xf32>
    %c0_47 = arith.constant 0 : index
    %c0_48 = arith.constant 0 : index
    %93 = vector.load %arg14[%c0_47, %c0_48] : memref<128x128xf32, #tpu.memory_space<vmem>>, vector<128x128xf32>
    %cst_49 = arith.constant dense<0.000000e+00> : vector<2x128xf32>
    %94 = tpu.matmul %92, %93, %cst_49 {dimension_numbers = #tpu.dot_dimension_numbers<[1], [0], [0], [1], [0, 0, 1, 1], [], []>} : vector<2x128xf32>, vector<128x128xf32>, vector<2x128xf32> -> vector<2x128xf32>
    %c0_50 = arith.constant 0 : index
    %c0_51 = arith.constant 0 : index
    %95 = vector.load %arg15[%c0_50, %c0_51] : memref<2x128xf32, #tpu.memory_space<vmem>>, vector<2x128xf32>
    tpu.vector_store %arg15[%c0_50, %c0_51], %94 {strides = array<i32>} : memref<2x128xf32, #tpu.memory_space<vmem>>, vector<2x128xf32>,
    return
  }
}

</mosaic_0001>

<bundles_post_ra>
// kernel: tpu_custom_call.1
= control target key start
LH: loop header
LB: loop body
LE: loop exit
PB: predicated region body
PF: predicated region fallthrough
CT: control target
= control target key end

     0   :  { %20 = vsyncpa [#allocation3], 0  ;;  %s1173_s0 = inlined_call_operand.hbm [shape: bf16[2,16,16], index: 0, kind: input, shape index: {}]   ;;  %s1174_s1 = inlined_call_operand.vmem [shape: f32[32,128], index: 1, kind: input, shape index: {}]   ;;  %s1175_s2 = inlined_call_operand.vmem [shape: f32[32,1], index: 2, kind: input, shape index: {}]   ;;  %s1176_s3 = inlined_call_operand.vmem [shape: f32[2,32], index: 3, kind: input, shape index: {}]   ;;  %s1177_s4 = inlined_call_operand.hbm [shape: f32[128,128], index: 4, kind: input, shape index: {}]   ;;  %s1178_s5 = inlined_call_operand.vmem [shape: f32[1,128], index: 5, kind: input, shape index: {}]   ;;  %s1179_s6 = inlined_call_operand.hbm [shape: f32[128,128], index: 6, kind: input, shape index: {}]   ;;  %s1180_s7 = inlined_call_operand.hbm [shape: f32[32,128], index: 7, kind: input, shape index: {}]   ;;  %s1181_s8 = inlined_call_operand.vmem [shape: f32[1,128], index: 8, kind: input, shape index: {}]   ;;  %s1182_s9 = inlined_call_operand.vmem [shape: f32[1,128], index: 9, kind: input, shape index: {}]   ;;  %s1183_s10 = inlined_call_operand.hbm [shape: f32[128,128], index: 10, kind: input, shape index: {}]   ;;  %s1184_s11 = inlined_call_operand.hbm [shape: f32[32,128], index: 11, kind: input, shape index: {}]   ;;  %s1185_s12 = inlined_call_operand.vmem [shape: f32[1,128], index: 12, kind: input, shape index: {}]   ;;  %s1186_s13 = inlined_call_operand.vmem [shape: f32[1,128], index: 13, kind: input, shape index: {}]   ;;  %s1187_s14 = inlined_call_operand.hbm [shape: f32[128,128], index: 14, kind: input, shape index: {}]   ;;  %s1188_s15 = inlined_call_operand.hbm [shape: f32[2,128], index: 15, kind: output, shape index: {}]  }
   0x1   :  { %21 = vsyncpa [#allocation6], 0 }
   0x2   :  { %22 = vsyncpa [#allocation9], 0 }
   0x3   :  { %23 = vsyncpa [#allocation12], 0  ;;  %s48_s20 = sshll.u32 %s1177_s4, 4  ;;  %s49_s20 = int_to_ptr.hbm [resolvable:$true] %s48_s20 }
   0x4   :  { %24 = vsyncpa [#allocation4], 0  ;;  %s924_s21 = smov [#allocation5]   ;;  %s76_s25 = sshll.u32 %s1180_s7, 4  ;;  %s77_s25 = int_to_ptr.hbm [resolvable:$true] %s76_s25 }
   0x5   :  { %s50_s22 = sshll.u32 %s924_s21, 4  ;;  %s925_s26 = smov 128   ;;  %s51_s22 = int_to_ptr.vmem [resolvable:$true] %s50_s22 }
   0x6   :  { %s926_s27 = smov 8   ;;  %s927_s28 = smov [#allocation8]  }
   0x7   :  { %56 = dma.hbm_to_vmem [thread:$0]  %s49_s20, 2048, %s51_s22, [#allocation6], %s925_s26, %s925_s26, %s926_s27  }
   0x8   :  { %s78_s29 = sshll.u32 %s927_s28, 4  ;;  %s106_s16 = sshll.u32 %s1184_s11, 4  ;;  %s79_s29 = int_to_ptr.vmem [resolvable:$true] %s78_s29  ;;  %s107_s16 = int_to_ptr.hbm [resolvable:$true] %s106_s16 }
   0x9   :  { %84 = dma.hbm_to_vmem [thread:$0]  %s77_s25, 512, %s79_s29, [#allocation9], %s925_s26, %s925_s26, %s926_s27  }
   0xa   :  { %s29_s18 = sshll.u32 %s1173_s0, 4  ;;  %s928_s19 = smov [#allocation11]   ;;  %s30_s18 = int_to_ptr.hbm [resolvable:$true] %s29_s18 }
   0xb   :  { %s108_s21 = sshll.u32 %s928_s19, 4  ;;  %s929_s20 = smov [#allocation2]   ;;  %s109_s21 = int_to_ptr.vmem [resolvable:$true] %s108_s21 }
   0xc   :  { %114 = dma.hbm_to_vmem [thread:$0]  %s107_s16, 512, %s109_s21, [#allocation12], %s925_s26, %s925_s26, %s926_s27  }
   0xd   :  { %s31_s11 = sshll.u32 %s929_s20, 4  ;;  %s930_s22 = smov 64   ;;  %s32_s11 = int_to_ptr.vmem [resolvable:$true] %s31_s11 }
   0xe   :  { %s931_s23 = smov 4   ;;  %s63_s28 = sshll.u32 %s1179_s6, 4  ;;  %s64_s28 = int_to_ptr.hbm [resolvable:$true] %s63_s28 }
   0xf   :  { %37 = dma.hbm_to_vmem [thread:$0]  %s30_s18, 256, %s32_s11, [#allocation3], %s930_s22, %s930_s22, %s931_s23  }
  0x10   :  { %s932_s0 = smov [#allocation7]   ;;  %s93_s7 = sshll.u32 %s1183_s10, 4  ;;  %s94_s7 = int_to_ptr.hbm [resolvable:$true] %s93_s7 }
  0x11   :  { %s65_s29 = sshll.u32 %s932_s0, 4  ;;  %s933_s16 = smov [#allocation10]   ;;  %s66_s29 = int_to_ptr.vmem [resolvable:$true] %s65_s29 }
  0x12   :  { %71 = dma.hbm_to_vmem [thread:$0]  %s64_s28, 2048, %s66_s29, [#allocation6], %s925_s26, %s925_s26, %s926_s27  }
  0x13   :  { %s95_s17 = sshll.u32 %s933_s16, 4  ;;  %s123_s21 = sshll.u32 %s1187_s14, 4  ;;  %s96_s17 = int_to_ptr.vmem [resolvable:$true] %s95_s17  ;;  %s124_s21 = int_to_ptr.hbm [resolvable:$true] %s123_s21 }
  0x14   :  { %101 = dma.hbm_to_vmem [thread:$0]  %s94_s7, 2048, %s96_s17, [#allocation9], %s925_s26, %s925_s26, %s926_s27  }
  0x15   :  { %s934_s6 = smov [#allocation13]  }
  0x16   :  { %s125_s20 = sshll.u32 %s934_s6, 4  ;;  %s126_s20 = int_to_ptr.vmem [resolvable:$true] %s125_s20 }
  0x17   :  { %131 = dma.hbm_to_vmem [thread:$0]  %s124_s21, 2048, %s126_s20, [#allocation12], %s925_s26, %s925_s26, %s926_s27  }
  0x18   :  { %914 = dma.done.wait [#allocation3], 256  }
  0x19   :  { %915 = vsyncadd [#allocation3], 4294967040 }
  0x1a   :  { %916 = dma.done.wait [#allocation6], 4096  }
  0x1b   :  { %917 = vsyncadd [#allocation6], 4294963200 }
  0x1c   :  { %918 = dma.done.wait [#allocation9], 2560  }
  0x1d   :  { %919 = vsyncadd [#allocation9], 4294964736 }
  0x1e   :  { %920 = dma.done.wait [#allocation12], 2560  }
  0x1f   :  { %921 = vsyncadd [#allocation12], 4294964736  ;;  %v188_v0 = vld [vmem:[#allocation5 + $0x78] sm:$0xff]  ;;  %v187_v1 = vld [vmem:[#allocation5 + $0x70] sm:$0xff]  ;;  %v935_v2 = vmov 0   ;;  %vm283_vm0 = vcmask 130048  }
  0x20   :  { %193 = vmatpush.msra.mxu0 %v188_v0  ;;  %711 = vset.pattern.permute.xlu0 %v935_v2  ;;  %v186_v3 = vld [vmem:[#allocation5 + $0x68] sm:$0xff]  ;;  %v185_v4 = vld [vmem:[#allocation5 + $0x60] sm:$0xff]  ;;  %v184_v5 = vld [vmem:[#allocation5 + $0x58] sm:$0xff]  ;;  %vm602_vm7 = vcmask 261120   ;;  %s936_s20 = smov [#allocation14]   ;;  %s670_s27 = sshll.u32 %s1188_s15, 4  ;;  %s671_s27 = int_to_ptr.hbm [resolvable:$true] %s670_s27 }
  0x21   :  { %712 = vset.pattern.permute.xlu1 %v935_v2  ;;  %v165_v6 = vld [vmem:[%s1175_s2] sm:$0xff]  ;;  %v182_v8 = vld [vmem:[#allocation5 + $0x48] sm:$0xff]  ;;  %v181_v9 = vld [vmem:[#allocation5 + $0x40] sm:$0xff]  ;;  %s668_s10 = sshll.u32 %s936_s20, 4  ;;  %s669_s10 = int_to_ptr.vmem [resolvable:$true] %s668_s10 }
  0x22   :  { %194 = vmatpush.msra.mxu0 %v187_v1  ;;  %224 = vperm.xlu0 %711, %v165_v6   ;;  %v183_v7 = vld [vmem:[#allocation5 + $0x50] sm:$0xff]  ;;  %v166_v10 = vld [vmem:[%s1175_s2 + $0x8] sm:$0xff]  ;;  %v167_v13 = vld [vmem:[%s1175_s2 + $0x10] sm:$0xff] }
  0x23   :  { %v180_v11 = vld [vmem:[#allocation5 + $0x38] sm:$0xff]  ;;  %v179_v12 = vld [vmem:[#allocation5 + $0x30] sm:$0xff]  ;;  %234 = vperm.xlu1 %712, %v167_v13   ;;  %v178_v14 = vld [vmem:[#allocation5 + $0x28] sm:$0xff] }
  0x24   :  { %195 = vmatpush.msra.mxu0 %v186_v3  ;;  %v177_v15 = vld [vmem:[#allocation5 + $0x20] sm:$0xff]  ;;  %v176_v16 = vld [vmem:[#allocation5 + $0x18] sm:$0xff]  ;;  %v175_v17 = vld [vmem:[#allocation5 + $0x10] sm:$0xff] }
  0x25   :  { %v168_v18 = vld [vmem:[%s1175_s2 + $0x18] sm:$0xff]  ;;  %v173_v20 = vld [vmem:[#allocation5] sm:$0xff]  ;;  %v169_v21 = vld [vmem:[%s1174_s1] sm:$0xff] }
  0x26   :  { %196 = vmatpush.msra.mxu0 %v185_v4  ;;  %v174_v19 = vld [vmem:[#allocation5 + $0x8] sm:$0xff]  ;;  %v170_v22 = vld [vmem:[%s1174_s1 + $0x8] sm:$0xff]  ;;  %v171_v23 = vld [vmem:[%s1174_s1 + $0x10] sm:$0xff] }
  0x27   :  { %v172_v24 = vld [vmem:[%s1174_s1 + $0x18] sm:$0xff]  ;;  %v713_v25 = vld [vmem:[%s1178_s5] ss:$0 sm:$0xff]  ;;  %v261_v29 = vld [vmem:[#allocation7 + $0x78] sm:$0xff] }
  0x28   :  { %197 = vmatpush.msra.mxu0 %v184_v5  ;;  %v260_v30 = vld [vmem:[#allocation7 + $0x70] sm:$0xff]  ;;  %329 = vmatpush.msra.mxu3 %v261_v29  ;;  %v259_v33 = vld [vmem:[#allocation7 + $0x68] sm:$0xff]  ;;  %v258_v36 = vld [vmem:[#allocation7 + $0x60] sm:$0xff] }
  0x29   :  { %v257_v39 = vld [vmem:[#allocation7 + $0x58] sm:$0xff]  ;;  %v256_v41 = vld [vmem:[#allocation7 + $0x50] sm:$0xff]  ;;  %v255_v46 = vld [vmem:[#allocation7 + $0x48] sm:$0xff] }
  0x2a   :  { %198 = vmatpush.msra.mxu0 %v183_v7  ;;  %229 = vperm.xlu0 %711, %v166_v10   ;;  %v1091_v48 = vld [vmem:[#allocation2] sm:$0xff]  ;;  %v254_v49 = vld [vmem:[#allocation7 + $0x40] sm:$0xff]  ;;  %v253_v51 = vld [vmem:[#allocation7 + $0x38] sm:$0xff] }
  0x2b   :  { %239 = vperm.xlu1 %712, %v168_v18   ;;  %330 = vmatpush.msra.mxu3 %v260_v30  ;;  %v252_v52 = vld [vmem:[#allocation7 + $0x30] sm:$0xff]  ;;  %v251_v55 = vld [vmem:[#allocation7 + $0x28] sm:$0xff]  ;;  %v250_v58 = vld [vmem:[#allocation7 + $0x20] sm:$0xff] }
  0x2c   :  { %199 = vmatpush.msra.mxu0 %v182_v8  ;;  %v249_v61 = vld [vmem:[#allocation7 + $0x18] sm:$0xff]  ;;  %v248_v63 = vld [vmem:[#allocation7 + $0x10] sm:$0xff]  ;;  %v247_v2 = vld [vmem:[#allocation7 + $0x8] sm:$0xff] }
  0x2d   :  { %331 = vmatpush.msra.mxu3 %v259_v33  ;;  %v1099_v4 = vld [vmem:[#allocation2 + $0x8] sm:$0xff]  ;;  %v246_v5 = vld [vmem:[#allocation7] sm:$0xff] }
  0x2e   :  { %200 = vmatpush.msra.mxu0 %v181_v9  ;;  %v262_v13 = vld [vmem:[#allocation8] sm:$0xff] }
  0x2f   :  { %332 = vmatpush.msra.mxu3 %v258_v36 }
  0x30   :  { %201 = vmatpush.msra.mxu0 %v180_v11 }
  0x31   :  { %333 = vmatpush.msra.mxu3 %v257_v39 }
  0x32   :  { %202 = vmatpush.msra.mxu0 %v179_v12  ;;  %v263_v12 = vld [vmem:[#allocation8 + $0x8] sm:$0xff] }
  0x33   :  { %334 = vmatpush.msra.mxu3 %v256_v41 }
  0x34   :  { %203 = vmatpush.msra.mxu0 %v178_v14  ;;  %v264_v14 = vld [vmem:[#allocation8 + $0x10] sm:$0xff] }
  0x35   :  { %335 = vmatpush.msra.mxu3 %v255_v46 }
  0x36   :  { %204 = vmatpush.msra.mxu0 %v177_v15 }
  0x37   :  { %336 = vmatpush.msra.mxu3 %v254_v49 }
  0x38   :  { %205 = vmatpush.msra.mxu0 %v176_v16 }
  0x39   :  { %337 = vmatpush.msra.mxu3 %v253_v51 }
  0x3a   :  { %206 = vmatpush.msra.mxu0 %v175_v17 }
  0x3b   :  { %338 = vmatpush.msra.mxu3 %v252_v52 }
  0x3c   :  { %207 = vmatpush.msra.mxu0 %v174_v19 }
  0x3d   :  { %339 = vmatpush.msra.mxu3 %v251_v55 }
  0x3e   :  { %208 = vmatpush.msra.mxu0 %v173_v20 }
  0x3f   :  { %209 = vmatmul.f32.vlgmr.msra.gmra.mxu0 %v169_v21  ;;  %340 = vmatpush.msra.mxu3 %v250_v58 }
  0x41   :  { %341 = vmatpush.msra.mxu3 %v249_v61 }
  0x43   :  { %342 = vmatpush.msra.mxu3 %v248_v63 }
  0x45   :  { %343 = vmatpush.msra.mxu3 %v247_v2 }
  0x47   :  { %212 = vmatmul.f32.gmra.mxu0 %v170_v22  ;;  %344 = vmatpush.msra.mxu3 %v246_v5  ;;  %v265_v22 = vld [vmem:[#allocation8 + $0x18] sm:$0xff] }
  0x4f   :  { %215 = vmatmul.f32.gmra.mxu0 %v171_v23 }
  0x57   :  { %218 = vmatmul.f32.gmra.mxu0 %v172_v24 }
  0x94   :  { %v1083_v26 = vpop.permute.xlu0 %224 }
  0x95   :  { %v1089_v44 = vpop.permute.xlu1 %234 }
  0x9c   :  { %v1086_v35 = vpop.permute.xlu0 %229 }
  0x9d   :  { %v1096_v57 = vpop.permute.xlu1 %239 }
  0xbc   :  { %v210_v27 = vpop.f32.mrf.mxu0 }
  0xbd   :  { %v211_v28 = vadd.f32 %v713_v25, %v210_v27 }
  0xbf   :  { %v242_v31 = vmul.f32 %v1083_v26, %v211_v28 }
  0xc1   :  { %v268_v38 = vpack.c.bf16 %v242_v31, %v242_v31 }
  0xc3   :  { %v279_v42 = vunpack.c.l.b16 %v268_v38 }
  0xc4   :  { %v213_v32 = vpop.f32.mrf.mxu0 }
  0xc5   :  { %v214_v34 = vadd.f32 %v713_v25, %v213_v32 }
  0xc7   :  { %v243_v37 = vmul.f32 %v1086_v35, %v214_v34 }
  0xc9   :  { %v269_v40 = vpack.c.bf16 %v243_v37, %v243_v37 }
  0xcb   :  { %v280_v43 = vunpack.c.l.b16 %v269_v40 }
  0xcc   :  { %v216_v45 = vpop.f32.mrf.mxu0 }
  0xcd   :  { %v281_v47 = vpack.c.b16 %v280_v43, %v279_v42  ;;  %v217_v50 = vadd.f32 %v713_v25, %v216_v45 }
  0xcf   :  { %294 = vmatpush.bf16.msra.mxu2 %v281_v47  ;;  %v244_v53 = vmul.f32 %v1089_v44, %v217_v50 }
  0xd1   :  { %v270_v59 = vpack.c.bf16 %v244_v53, %v244_v53 }
  0xd2   :  { %687 = vmatmul.msk.bf16.vlgmr.msra.gmra.mxu2 %vm283_vm0, %v1091_v48 }
  0xd3   :  { %v308_v0 = vunpack.c.l.b16 %v270_v59 }
  0xd4   :  { %v219_v54 = vpop.f32.mrf.mxu0 }
  0xd5   :  { %v220_v56 = vadd.f32 %v713_v25, %v219_v54 }
  0xd7   :  { %v245_v60 = vmul.f32 %v1096_v57, %v220_v56 }
  0xd9   :  { %v271_v62 = vpack.c.bf16 %v245_v60, %v245_v60 }
  0xdb   :  { %v309_v1 = vunpack.c.l.b16 %v271_v62 }
  0xdd   :  { %v310_v3 = vpack.c.b16 %v309_v1, %v308_v0 }
  0xdf   :  { %322 = vmatpush.bf16.msrb.mxu2 %v310_v3  ;;  %v714_v3 = vld [vmem:[%s1181_s8] ss:$0 sm:$0xff] }
  0xe2   :  { %692 = vmatmul.msk.bf16.vlgmr.msrb.gmra.mxu2 %vm283_vm0, %v1099_v4 }
 0x155   :  { %v296_v6 = vpop.f32.mrf.mxu2 }
 0x156   :  { %345 = vmatmul.f32.vlgmr.msra.gmra.mxu3 %v296_v6 }
 0x15d   :  { %v298_v7 = vpop.f32.mrf.mxu2 }
 0x15e   :  { %348 = vmatmul.f32.gmra.mxu3 %v298_v7 }
 0x165   :  { %v324_v8 = vpop.f32.mrf.mxu2 }
 0x166   :  { %351 = vmatmul.f32.gmra.mxu3 %v324_v8 }
 0x16d   :  { %v326_v9 = vpop.f32.mrf.mxu2 }
 0x16e   :  { %354 = vmatmul.f32.gmra.mxu3 %v326_v9 }
 0x1d9   :  { %v346_v10 = vpop.f32.mrf.mxu3 }
 0x1da   :  { %v347_v17 = vadd.f32 %v346_v10, %v262_v13  ;;  %v715_v10 = vld [vmem:[%s1182_s9] ss:$0 sm:$0xff] }
 0x1dc   :  { %v358_v20 = vmul.f32 %v347_v17, %v1083_v26 }
 0x1de   :  { %v371_v25 = vmul.f32 %v358_v20, %v358_v20 }
 0x1e1   :  { %v349_v11 = vpop.f32.mrf.mxu3 }
 0x1e2   :  { %v350_v15 = vadd.f32 %v349_v11, %v263_v12 }
 0x1e4   :  { %v359_v19 = vmul.f32 %v350_v15, %v1086_v35 }
 0x1e6   :  { %v372_v23 = vmul.f32 %v359_v19, %v359_v19  ;;  %v362_v27 = vadd.f32 %v359_v19, %v358_v20 }
 0x1e8   :  { %v375_v30 = vadd.f32 %v372_v23, %v371_v25 }
 0x1e9   :  { %v352_v16 = vpop.f32.mrf.mxu3 }
 0x1ea   :  { %v353_v18 = vadd.f32 %v352_v16, %v264_v14 }
 0x1ec   :  { %v360_v21 = vmul.f32 %v353_v18, %v1089_v44 }
 0x1ee   :  { %v373_v28 = vmul.f32 %v360_v21, %v360_v21  ;;  %v363_v31 = vadd.f32 %v362_v27, %v360_v21 }
 0x1f0   :  { %v376_v33 = vadd.f32 %v375_v30, %v373_v28 }
 0x1f1   :  { %v355_v24 = vpop.f32.mrf.mxu3 }
 0x1f2   :  { %v356_v29 = vadd.f32 %v355_v24, %v265_v22 }
 0x1f4   :  { %v361_v32 = vmul.f32 %v356_v29, %v1096_v57 }
 0x1f6   :  { %v364_v34 = vadd.f32 %v363_v31, %v361_v32  ;;  %v374_v36 = vmul.f32 %v361_v32, %v361_v32 }
 0x1f8   :  { %v365_v37 = vrot.slane %v364_v34, 4  ;;  %v377_v38 = vadd.f32 %v376_v33, %v374_v36 }
 0x1fa   :  { %v366_v39 = vadd.f32 %v365_v37, %v364_v34  ;;  %v378_v40 = vrot.slane %v377_v38, 4 }
 0x1fc   :  { %v367_v41 = vrot.slane %v366_v39, 2  ;;  %v379_v42 = vadd.f32 %v378_v40, %v377_v38 }
 0x1fe   :  { %v368_v43 = vadd.f32 %v367_v41, %v366_v39  ;;  %v380_v45 = vrot.slane %v379_v42, 2  ;;  %v445_v41 = vld [vmem:[#allocation10 + $0x78] sm:$0xff] }
 0x200   :  { %v369_v46 = vrot.slane %v368_v43, 1  ;;  %v381_v47 = vadd.f32 %v380_v45, %v379_v42  ;;  %v444_v42 = vld [vmem:[#allocation10 + $0x70] sm:$0xff]  ;;  %v442_v45 = vld [vmem:[#allocation10 + $0x60] sm:$0xff] }
 0x202   :  { %v370_v49 = vadd.f32 %v369_v46, %v368_v43  ;;  %v382_v50 = vrot.slane %v381_v47, 1  ;;  %v443_v43 = vld [vmem:[#allocation10 + $0x68] sm:$0xff]  ;;  %v441_v46 = vld [vmem:[#allocation10 + $0x58] sm:$0xff] }
 0x204   :  { %v383_v51 = vadd.f32 %v382_v50, %v381_v47  ;;  %v384_v52 = vmul.f32 0.03125, %v370_v49  ;;  %v440_v47 = vld [vmem:[#allocation10 + $0x50] sm:$0xff]  ;;  %v439_v49 = vld [vmem:[#allocation10 + $0x48] sm:$0xff]  ;;  %v438_v50 = vld [vmem:[#allocation10 + $0x40] sm:$0xff] }
 0x206   :  { %v385_v53 = vmul.f32 0.03125, %v383_v51  ;;  %v386_v54 = vmul.f32 %v384_v52, %v384_v52  ;;  %v391_v1 = vsub.f32 %v353_v18, %v384_v52  ;;  %v392_v2 = vsub.f32 %v356_v29, %v384_v52  ;;  %v437_v51 = vld [vmem:[#allocation10 + $0x38] sm:$0xff] }
 0x207   :  { %v389_v5 = vsub.f32 %v347_v17, %v384_v52  ;;  %v390_v6 = vsub.f32 %v350_v15, %v384_v52  ;;  %v436_v52 = vld [vmem:[#allocation10 + $0x30] sm:$0xff] }
 0x208   :  { %v387_v55 = vsub.f32 %v385_v53, %v386_v54  ;;  %v434_v53 = vld [vmem:[#allocation10 + $0x20] sm:$0xff]  ;;  %v432_v54 = vld [vmem:[#allocation10 + $0x10] sm:$0xff] }
 0x20a   :  { %v388_v56 = vmax.f32 %v387_v55, 0.0  ;;  %v431_v55 = vld [vmem:[#allocation10 + $0x8] sm:$0xff] }
 0x20c   :  { %v393_v58 = vadd.f32 1e-05, %v388_v56  ;;  %v430_v56 = vld [vmem:[#allocation10] sm:$0xff] }
 0x20e   :  { %718 = vrsqrt.f32 %v393_v58  ;;  %vm400_vm2 = vweird.f32 %v393_v58 }
 0x214   :  { %v719_v59 = vpop.eup %718 }
 0x215   :  { %v395_v60 = vmul.f32 %v719_v59, %v393_v58  ;;  %vm401_vm1 = vweird.f32 %v719_v59 }
 0x216   :  { %vm402_vm3 = vmor %vm400_vm2, %vm401_vm1 }
 0x217   :  { %v396_v61 = vmul.f32 %v719_v59, %v395_v60 }
 0x219   :  { %v397_v62 = vmul.f32 0.5, %v396_v61 }
 0x21b   :  { %v398_v63 = vsub.f32 1.5, %v397_v62 }
 0x21d   :  { %v399_v0 = vmul.f32 %v719_v59, %v398_v63 }
 0x21f   :  { %v403_v7 = vsel %vm402_vm3, %v719_v59, %v399_v0  ;;  %v447_v0 = vld [vmem:[#allocation11 + $0x8] sm:$0xff] }
 0x220   :  { %v406_v8 = vmul.f32 %v403_v7, %v391_v1  ;;  %v407_v9 = vmul.f32 %v403_v7, %v392_v2  ;;  %v404_v11 = vmul.f32 %v403_v7, %v389_v5  ;;  %v405_v12 = vmul.f32 %v403_v7, %v390_v6  ;;  %v446_v1 = vld [vmem:[#allocation11] sm:$0xff]  ;;  %v448_v2 = vld [vmem:[#allocation11 + $0x10] sm:$0xff] }
 0x222   :  { %v413_v13 = vmul.f32 %v714_v3, %v406_v8  ;;  %v414_v14 = vmul.f32 %v714_v3, %v407_v9  ;;  %v411_v16 = vmul.f32 %v714_v3, %v404_v11  ;;  %v412_v18 = vmul.f32 %v714_v3, %v405_v12  ;;  %v449_v11 = vld [vmem:[#allocation11 + $0x18] sm:$0xff] }
 0x224   :  { %v421_v19 = vadd.f32 %v715_v10, %v414_v14  ;;  %v418_v20 = vadd.f32 %v715_v10, %v411_v16  ;;  %v419_v21 = vadd.f32 %v715_v10, %v412_v18  ;;  %v420_v22 = vadd.f32 %v715_v10, %v413_v13 }
 0x226   :  { %v425_v23 = vmax.f32 %v421_v19, 0.0  ;;  %v422_v17 = vmax.f32 %v418_v20, 0.0  ;;  %v423_v15 = vmax.f32 %v419_v21, 0.0  ;;  %v424_v24 = vmax.f32 %v420_v22, 0.0 }
 0x228   :  { %v1114_v25 = vmul.f32 %v425_v23, %v1096_v57  ;;  %v1117_v27 = vmul.f32 %v422_v17, %v1083_v26  ;;  %v1120_v28 = vmul.f32 %v423_v15, %v1086_v35  ;;  %v1123_v29 = vmul.f32 %v424_v24, %v1089_v44 }
 0x22a   :  { %v452_v30 = vpack.c.bf16 %v1117_v27, %v1117_v27  ;;  %v453_v31 = vpack.c.bf16 %v1120_v28, %v1120_v28  ;;  %v454_v32 = vpack.c.bf16 %v1123_v29, %v1123_v29  ;;  %v455_v33 = vpack.c.bf16 %v1114_v25, %v1114_v25 }
 0x22c   :  { %v458_v34 = vunpack.c.l.b16 %v452_v30  ;;  %v459_v36 = vunpack.c.l.b16 %v453_v31  ;;  %v478_v37 = vunpack.c.l.b16 %v454_v32  ;;  %v479_v38 = vunpack.c.l.b16 %v455_v33 }
 0x22e   :  { %v460_v39 = vpack.c.b16 %v459_v36, %v458_v34  ;;  %v480_v40 = vpack.c.b16 %v479_v38, %v478_v37 }
 0x230   :  { %469 = vmatpush.bf16.msra.mxu1 %v460_v39  ;;  %489 = vmatpush.bf16.msra.mxu2 %v480_v40 }
 0x233   :  { %693 = vmatmul.msk.bf16.vlgmr.msra.gmra.mxu1 %vm283_vm0, %v1091_v48  ;;  %694 = vmatmul.msk.bf16.vlgmr.msra.gmra.mxu2 %vm283_vm0, %v1099_v4  ;;  %v435_v48 = vld [vmem:[#allocation10 + $0x28] sm:$0xff]  ;;  %v433_v4 = vld [vmem:[#allocation10 + $0x18] sm:$0xff] }
 0x234   :  { %496 = vmatpush.msrb.mxu1 %v445_v41 }
 0x236   :  { %497 = vmatpush.msrb.mxu1 %v444_v42 }
 0x238   :  { %498 = vmatpush.msrb.mxu1 %v443_v43 }
 0x23a   :  { %499 = vmatpush.msrb.mxu1 %v442_v45 }
 0x23c   :  { %500 = vmatpush.msrb.mxu1 %v441_v46 }
 0x23e   :  { %501 = vmatpush.msrb.mxu1 %v440_v47 }
 0x240   :  { %502 = vmatpush.msrb.mxu1 %v439_v49 }
 0x242   :  { %503 = vmatpush.msrb.mxu1 %v438_v50 }
 0x244   :  { %504 = vmatpush.msrb.mxu1 %v437_v51  ;;  %v641_v51 = vld [vmem:[#allocation13 + $0x78] sm:$0xff] }
 0x245   :  { %642 = vmatpush.msrb.mxu0 %v641_v51 }
 0x246   :  { %505 = vmatpush.msrb.mxu1 %v436_v52  ;;  %v640_v52 = vld [vmem:[#allocation13 + $0x70] sm:$0xff] }
 0x247   :  { %643 = vmatpush.msrb.mxu0 %v640_v52 }
 0x248   :  { %506 = vmatpush.msrb.mxu1 %v435_v48 }
 0x24a   :  { %507 = vmatpush.msrb.mxu1 %v434_v53 }
 0x24c   :  { %508 = vmatpush.msrb.mxu1 %v433_v4  ;;  %v639_v4 = vld [vmem:[#allocation13 + $0x68] sm:$0xff] }
 0x24d   :  { %644 = vmatpush.msrb.mxu0 %v639_v4 }
 0x24e   :  { %509 = vmatpush.msrb.mxu1 %v432_v54 }
 0x250   :  { %510 = vmatpush.msrb.mxu1 %v431_v55  ;;  %v638_v55 = vld [vmem:[#allocation13 + $0x60] sm:$0xff] }
 0x251   :  { %645 = vmatpush.msrb.mxu0 %v638_v55 }
 0x252   :  { %511 = vmatpush.msrb.mxu1 %v430_v56 }
 0x2b0   :  { %v471_v58 = vpop.f32.mrf.mxu1 }
 0x2b1   :  { %512 = vmatmul.f32.vlgmr.msrb.gmra.mxu1 %v471_v58  ;;  %v637_v58 = vld [vmem:[#allocation13 + $0x58] sm:$0xff] }
 0x2b2   :  { %646 = vmatpush.msrb.mxu0 %v637_v58 }
 0x2b6   :  { %v491_v60 = vpop.f32.mrf.mxu2 }
 0x2b8   :  { %v473_v59 = vpop.f32.mrf.mxu1 }
 0x2b9   :  { %515 = vmatmul.f32.gmra.mxu1 %v473_v59 }
 0x2be   :  { %v493_v61 = vpop.f32.mrf.mxu2 }
 0x2c1   :  { %518 = vmatmul.f32.gmra.mxu1 %v491_v60  ;;  %v636_v60 = vld [vmem:[#allocation13 + $0x50] sm:$0xff] }
 0x2c2   :  { %647 = vmatpush.msrb.mxu0 %v636_v60 }
 0x2c9   :  { %521 = vmatmul.f32.gmra.mxu1 %v493_v61 }
 0x32e   :  { %v513_v62 = vpop.f32.mrf.mxu1 }
 0x32f   :  { %v1139_v6 = vadd.f32 %v513_v62, %v446_v1  ;;  %v635_v62 = vld [vmem:[#allocation13 + $0x48] sm:$0xff] }
 0x330   :  { %648 = vmatpush.msrb.mxu0 %v635_v62 }
 0x331   :  { %v525_v9 = vmul.f32 %v1139_v6, %v1083_v26 }
 0x333   :  { %v538_v14 = vmul.f32 %v525_v9, %v525_v9 }
 0x336   :  { %v516_v63 = vpop.f32.mrf.mxu1 }
 0x337   :  { %v1137_v3 = vadd.f32 %v516_v63, %v447_v0  ;;  %v716_v0 = vld [vmem:[%s1185_s12] ss:$0 sm:$0xff] }
 0x339   :  { %v526_v8 = vmul.f32 %v1137_v3, %v1086_v35 }
 0x33b   :  { %v539_v12 = vmul.f32 %v526_v8, %v526_v8  ;;  %v529_v16 = vadd.f32 %v526_v8, %v525_v9  ;;  %v634_v9 = vld [vmem:[#allocation13 + $0x40] sm:$0xff] }
 0x33c   :  { %649 = vmatpush.msrb.mxu0 %v634_v9 }
 0x33d   :  { %v542_v20 = vadd.f32 %v539_v12, %v538_v14 }
 0x33e   :  { %v519_v5 = vpop.f32.mrf.mxu1 }
 0x33f   :  { %v1141_v7 = vadd.f32 %v519_v5, %v448_v2 }
 0x341   :  { %v527_v10 = vmul.f32 %v1141_v7, %v1089_v44 }
 0x343   :  { %v540_v18 = vmul.f32 %v527_v10, %v527_v10  ;;  %v530_v21 = vadd.f32 %v529_v16, %v527_v10  ;;  %v633_v16 = vld [vmem:[#allocation13 + $0x38] sm:$0xff] }
 0x344   :  { %650 = vmatpush.msrb.mxu0 %v633_v16 }
 0x345   :  { %v543_v23 = vadd.f32 %v542_v20, %v540_v18 }
 0x346   :  { %v522_v13 = vpop.f32.mrf.mxu1 }
 0x347   :  { %v523_v19 = vadd.f32 %v522_v13, %v449_v11  ;;  %v717_v11 = vld [vmem:[%s1186_s13] ss:$0 sm:$0xff] }
 0x349   :  { %v528_v22 = vmul.f32 %v523_v19, %v1096_v57 }
 0x34b   :  { %v531_v17 = vadd.f32 %v530_v21, %v528_v22  ;;  %v541_v15 = vmul.f32 %v528_v22, %v528_v22 }
 0x34d   :  { %v532_v24 = vrot.slane %v531_v17, 4  ;;  %v544_v30 = vadd.f32 %v543_v23, %v541_v15 }
 0x34f   :  { %v533_v31 = vadd.f32 %v532_v24, %v531_v17  ;;  %v545_v32 = vrot.slane %v544_v30, 4  ;;  %v631_v17 = vld [vmem:[#allocation13 + $0x28] sm:$0xff] }
 0x351   :  { %v534_v33 = vrot.slane %v533_v31, 2  ;;  %v546_v34 = vadd.f32 %v545_v32, %v544_v30 }
 0x353   :  { %v535_v36 = vadd.f32 %v534_v33, %v533_v31  ;;  %v547_v37 = vrot.slane %v546_v34, 2  ;;  %v630_v31 = vld [vmem:[#allocation13 + $0x20] sm:$0xff] }
 0x355   :  { %v536_v38 = vrot.slane %v535_v36, 1  ;;  %v548_v39 = vadd.f32 %v547_v37, %v546_v34 }
 0x357   :  { %v537_v40 = vadd.f32 %v536_v38, %v535_v36  ;;  %v549_v41 = vrot.slane %v548_v39, 1  ;;  %v629_v36 = vld [vmem:[#allocation13 + $0x18] sm:$0xff] }
 0x359   :  { %v550_v42 = vadd.f32 %v549_v41, %v548_v39  ;;  %v551_v43 = vmul.f32 0.03125, %v537_v40  ;;  %v628_v39 = vld [vmem:[#allocation13 + $0x10] sm:$0xff] }
 0x35b   :  { %v552_v45 = vmul.f32 0.03125, %v550_v42  ;;  %v553_v46 = vmul.f32 %v551_v43, %v551_v43  ;;  %v559_v63 = vsub.f32 %v523_v19, %v551_v43  ;;  %v558_v1 = vsub.f32 %v1141_v7, %v551_v43  ;;  %v627_v42 = vld [vmem:[#allocation13 + $0x8] sm:$0xff] }
 0x35c   :  { %v557_v2 = vsub.f32 %v1137_v3, %v551_v43  ;;  %v556_v5 = vsub.f32 %v1139_v6, %v551_v43  ;;  %v632_v3 = vld [vmem:[#allocation13 + $0x30] sm:$0xff] }
 0x35d   :  { %v554_v47 = vsub.f32 %v552_v45, %v553_v46  ;;  %651 = vmatpush.msrb.mxu0 %v632_v3 }
 0x35f   :  { %v555_v49 = vmax.f32 %v554_v47, 0.0  ;;  %652 = vmatpush.msrb.mxu0 %v631_v17 }
 0x361   :  { %v560_v50 = vadd.f32 1e-05, %v555_v49  ;;  %653 = vmatpush.msrb.mxu0 %v630_v31 }
 0x363   :  { %720 = vrsqrt.f32 %v560_v50  ;;  %vm567_vm5 = vweird.f32 %v560_v50  ;;  %654 = vmatpush.msrb.mxu0 %v629_v36 }
 0x365   :  { %655 = vmatpush.msrb.mxu0 %v628_v39 }
 0x367   :  { %656 = vmatpush.msrb.mxu0 %v627_v42 }
 0x369   :  { %v721_v48 = vpop.eup %720 }
 0x36a   :  { %v562_v53 = vmul.f32 %v721_v48, %v560_v50  ;;  %vm568_vm4 = vweird.f32 %v721_v48 }
 0x36b   :  { %vm569_vm6 = vmor %vm567_vm5, %vm568_vm4 }
 0x36c   :  { %v563_v54 = vmul.f32 %v721_v48, %v562_v53 }
 0x36e   :  { %v564_v56 = vmul.f32 0.5, %v563_v54 }
 0x370   :  { %v565_v59 = vsub.f32 1.5, %v564_v56 }
 0x372   :  { %v566_v61 = vmul.f32 %v721_v48, %v565_v59 }
 0x374   :  { %v570_v8 = vsel %vm569_vm6, %v721_v48, %v566_v61 }
 0x375   :  { %v574_v10 = vmul.f32 %v570_v8, %v559_v63  ;;  %v573_v12 = vmul.f32 %v570_v8, %v558_v1  ;;  %v572_v13 = vmul.f32 %v570_v8, %v557_v2  ;;  %v571_v14 = vmul.f32 %v570_v8, %v556_v5 }
 0x377   :  { %v581_v18 = vmul.f32 %v716_v0, %v574_v10  ;;  %v580_v19 = vmul.f32 %v716_v0, %v573_v12  ;;  %v579_v7 = vmul.f32 %v716_v0, %v572_v13  ;;  %v578_v20 = vmul.f32 %v716_v0, %v571_v14 }
 0x379   :  { %v588_v6 = vadd.f32 %v717_v11, %v581_v18  ;;  %v587_v21 = vadd.f32 %v717_v11, %v580_v19  ;;  %v586_v22 = vadd.f32 %v717_v11, %v579_v7  ;;  %v585_v23 = vadd.f32 %v717_v11, %v578_v20 }
 0x37b   :  { %v592_v15 = vmax.f32 %v588_v6, 0.0  ;;  %v591_v24 = vmax.f32 %v587_v21, 0.0  ;;  %v590_v30 = vmax.f32 %v586_v22, 0.0  ;;  %v589_v34 = vmax.f32 %v585_v23, 0.0 }
 0x37d   :  { %v596_v32 = vmul.f32 %v592_v15, %v1096_v57  ;;  %v595_v33 = vmul.f32 %v591_v24, %v1089_v44  ;;  %v594_v38 = vmul.f32 %v590_v30, %v1086_v35  ;;  %v593_v41 = vmul.f32 %v589_v34, %v1083_v26  ;;  %v626_v44 = vld [vmem:[#allocation13] sm:$0xff]  ;;  %v601_v35 = vld [vmem:[%s1176_s3] sm:$0x3] }
 0x37e   :  { %657 = vmatpush.msrb.mxu0 %v626_v44 }
 0x37f   :  { %v600_v37 = vadd.f32 %v596_v32, %v1114_v25  ;;  %v599_v40 = vadd.f32 %v595_v33, %v1123_v29  ;;  %v598_v57 = vadd.f32 %v594_v38, %v1120_v28  ;;  %v597_v43 = vadd.f32 %v593_v41, %v1117_v27 }
 0x381   :  { %618 = vmatpush.msrb.mxu2 %v600_v37 }
 0x383   :  { %619 = vmatpush.msrb.mxu2 %v599_v40 }
 0x385   :  { %620 = vmatpush.msrb.mxu2 %v598_v57 }
 0x387   :  { %621 = vmatpush.msrb.mxu2 %v597_v43 }
 0x388   :  { %695 = vmatmul.msk.f32.vlgmr.msrb.gmra.mxu2 %vm602_vm7, %v601_v35 }
 0x40b   :  { %v623_v26 = vpop.f32.mrf.mxu2 }
 0x40c   :  { %658 = vmatmul.f32.vlgmr.msrb.gmra.mxu0 %v623_v26 }
 0x489   :  { %v659_v25 = vpop.f32.mrf.mxu0 }
 0x48a   :  { %662 = vst [vmem:[#allocation14] sm:$0x3] %v659_v25 }
 0x48b   :  { %673 = dma.vmem_to_hbm [thread:$0]  %s669_s10, 32, %s671_s27, [#allocation4]  }
 0x48c   :  { %922 = dma.done.wait [#allocation4], 32  }
 0x48d   :  { %923 = vsyncadd [#allocation4], 4294967264 }
 0x48e   :  { %678 = vsyncpa [#allocation3], 1 }
 0x48f   :  { %679 = vsyncpa [#allocation6], 1 }
 0x490   :  { %680 = vsyncpa [#allocation9], 1 }
 0x491   :  { %681 = vsyncpa [#allocation12], 1 }
 0x492   :  { %682 = vsyncpa [#allocation4], 1 }

</bundles_post_ra>
